<compile_context>
chip_gen: v5e
topology: v5e:2x2
jax: 0.10.0
libtpu: 0.0.40
codegen_flags: <defaults>
</compile_context>

<pallas_src>
import functools

import numpy as np
import jax
import jax.numpy as jnp
from jax import lax
from jax.experimental import pallas as pl
from jax.experimental.pallas import tpu as pltpu


# ---------------------------------------------------------------------------
# Static tiling helpers.
# ---------------------------------------------------------------------------
_LANE = 128          # last-dim granularity (lanes)
_TM_MAX = 512        # max rows per output tile
_TN_MAX = 512        # max cols per output tile (multiple of 128 -> lane-dense stores)
_TK_MAX = 1024       # max contraction tile
_VMEM_LIMIT = 48 * 1024 * 1024   # safe on v5e/v6e (128 MiB) and v7x (64 MiB)


def _round_up(x, m):
    return ((x + m - 1) // m) * m


def _sublane(dtype):
    """Sublane packing of the compute dtype: f32->8, bf16/f16->16, int8/fp8->32."""
    return {4: 8, 2: 16, 1: 32}.get(jnp.dtype(dtype).itemsize, 8)


def _pick_tile(dim, align, max_tile):
    """Largest tile that is a multiple of `align`, <= max_tile, and divides the
    minimally padded dim round_up(dim, align).  Returns (tile, padded_dim).
    Avoids the old clip-then-repad behaviour (K=520 -> tile 640, pad 640,
    instead of tile 512, pad 1024)."""
    dim = max(int(dim), 1)
    padded = _round_up(dim, align)
    t = min(max_tile, padded)
    t = max(align, (t // align) * align)
    while padded % t:
        t -= align
    return t, padded


def _split_for_megacore(B, tm, Mp, tn, Np, m_align):
    """v7x has 2 TensorCores per chip; if the whole problem is a single output
    tile, split N (preferred, keeps lane-dense stores) or M so the 'parallel'
    grid axes expose >= 2 tiles."""
    if B * (Mp // tm) * (Np // tn) >= 2:
        return tm, tn
    if Np // _LANE >= 2:
        t = (Np // 2) // _LANE * _LANE
        while t >= _LANE and Np % t:
            t -= _LANE
        if t >= _LANE:
            return tm, t
    if Mp // m_align >= 2:
        t = (Mp // 2) // m_align * m_align
        while t >= m_align and Mp % t:
            t -= m_align
        if t >= m_align:
            return t, tn
    return tm, tn


def _broadcast_batch_indices(out_batch, in_batch):
    """For each flat index into the broadcast batch shape, the flat index into the
    (un-broadcast) operand's batch.  Lets the kernel gather the original operand
    through its index_map instead of materializing broadcast copies in HBM."""
    out_batch = tuple(int(d) for d in out_batch)
    in_batch = tuple(int(d) for d in in_batch)
    B = int(np.prod(out_batch, dtype=np.int64)) if out_batch else 1
    if not in_batch or int(np.prod(in_batch, dtype=np.int64)) == 1:
        return np.zeros((B,), dtype=np.int32)
    in_full = (1,) * (len(out_batch) - len(in_batch)) + in_batch
    src = np.arange(int(np.prod(in_batch, dtype=np.int64)), dtype=np.int32).reshape(in_full)
    return np.ascontiguousarray(np.broadcast_to(src, out_batch)).reshape(-1)


# ---------------------------------------------------------------------------
# Kernel: tiled batched matmul with f32 accumulator (P1 + P2 + P3).
# ---------------------------------------------------------------------------
def _bmm_kernel(a_idx_ref, b_idx_ref, a_ref, b_ref, o_ref, acc_ref):
    # a_ref: (tm, tk), b_ref: (tk, tn), o_ref: (tm, tn), acc_ref: f32 (tm, tn).
    k = pl.program_id(3)

    @pl.when(k == 0)
    def _init():
        acc_ref[...] = jnp.zeros_like(acc_ref)

    # f32 inputs (incl. the integer-in-f32 path) need full MXU precision for
    # torch.float32 parity; bf16/f16 inputs keep the fast single-pass path.
    prec = (lax.Precision.HIGHEST
            if a_ref.dtype == jnp.float32 else lax.Precision.DEFAULT)
    acc_ref[...] += jnp.dot(a_ref[...], b_ref[...],
                            preferred_element_type=jnp.float32,
                            precision=prec)

    @pl.when(k == pl.num_programs(3) - 1)
    def _store():
        o_ref[...] = acc_ref[...].astype(o_ref.dtype)


@functools.partial(jax.jit, static_argnames=("tm", "tn", "tk", "out_dtype"))
def _pallas_bmm(a_idx, b_idx, a3, b3, *, tm, tn, tk, out_dtype):
    """a3: (Ba, M, K), b3: (Bb, K, N); a_idx/b_idx: (B,) int32 batch-gather indices.
    Returns (B, M, N) in out_dtype."""
    _, M, K = a3.shape
    _, _, N = b3.shape
    B = a_idx.shape[0]

    Mp, Np, Kp = _round_up(M, tm), _round_up(N, tn), _round_up(K, tk)

    # Zero padding is inert for matmul.  Only pad when actually needed (jnp.pad
    # materializes a full extra HBM copy of the operand).
    a_p = a3 if (Mp == M and Kp == K) else jnp.pad(a3, ((0, 0), (0, Mp - M), (0, Kp - K)))
    b_p = b3 if (Kp == K and Np == N) else jnp.pad(b3, ((0, 0), (0, Kp - K), (0, Np - N)))

    grid = (B, Mp // tm, Np // tn, Kp // tk)
    out_itemsize = np.dtype(out_dtype).itemsize

    out = pl.pallas_call(
        _bmm_kernel,
        out_shape=jax.ShapeDtypeStruct((B, Mp, Np), out_dtype),
        grid_spec=pltpu.PrefetchScalarGridSpec(
            num_scalar_prefetch=2,
            grid=grid,
            in_specs=[
                pl.BlockSpec((pl.Squeezed(), tm, tk),
                             lambda b, i, j, k, ai, bi: (ai[b], i, k)),
                pl.BlockSpec((pl.Squeezed(), tk, tn),
                             lambda b, i, j, k, ai, bi: (bi[b], k, j)),
            ],
            out_specs=pl.BlockSpec((pl.Squeezed(), tm, tn),
                                   lambda b, i, j, k, ai, bi: (b, i, j)),
            scratch_shapes=[pltpu.VMEM((tm, tn), jnp.float32)],
        ),
        compiler_params=pltpu.CompilerParams(
            dimension_semantics=("parallel", "parallel", "parallel", "arbitrary"),
            vmem_limit_bytes=_VMEM_LIMIT,
        ),
        cost_estimate=pl.CostEstimate(
            flops=2 * B * Mp * Np * Kp,
            transcendentals=0,
            # Count unique bytes of each operand (not B x, which over-counted
            # broadcast operands) plus the output.
            bytes_accessed=(a_p.size * a_p.dtype.itemsize
                            + b_p.size * b_p.dtype.itemsize
                            + B * Mp * Np * out_itemsize),
        ),
    )(a_idx, b_idx, a_p, b_p)

    if Mp != M or Np != N:
        out = out[:, :M, :N]
    return out


# ---------------------------------------------------------------------------
# torch.matmul-equivalent wrapper.
# ---------------------------------------------------------------------------
def matmul(a, b):
    """Forward pass of the `Matmul` module: torch.matmul(a, b)."""
    a = jnp.asarray(a)
    b = jnp.asarray(b)

    out_dtype = jnp.promote_types(a.dtype, b.dtype)

    # torch 1-D promotion rules.
    a_was_1d = a.ndim == 1
    b_was_1d = b.ndim == 1
    if a_was_1d:
        a = a[None, :]          # (K,) -> (1, K)
    if b_was_1d:
        b = b[:, None]          # (K,) -> (K, 1)

    M, K = (int(d) for d in a.shape[-2:])
    K2, N = (int(d) for d in b.shape[-2:])
    if K != K2:
        raise ValueError(f"inner dimensions must match: {K} vs {K2}")

    batch_shape = tuple(int(d) for d in jnp.broadcast_shapes(a.shape[:-2], b.shape[:-2]))
    B = int(np.prod(batch_shape, dtype=np.int64)) if batch_shape else 1

    def _finalize(out3):
        out = out3.reshape(batch_shape + (M, N))
        if a_was_1d:
            out = out[..., 0, :]
        if b_was_1d:
            out = out[..., 0]
        return out

    # Degenerate / empty shapes: torch returns zeros; the tiled grid would be malformed.
    if B == 0 or M == 0 or N == 0 or K == 0:
        return _finalize(jnp.zeros((B, M, N), dtype=out_dtype))

    # MXU has no exact integer path on every generation (none at all on v7x):
    # integer inputs are computed in f32 (HIGHEST precision) and rounded back.
    # TODO(synk): exact only while products/sums stay below 2**24; add a VPU
    # integer path (and torch-style overflow semantics) if needed.
    if jnp.issubdtype(out_dtype, jnp.floating):
        integer_out = False
        # f64 (x64 mode) and f16 are computed in f32; bf16 stays bf16.
        compute_dtype = out_dtype if out_dtype == jnp.bfloat16 else jnp.float32
    else:
        integer_out = True
        compute_dtype = jnp.float32

    a_batch = int(np.prod(a.shape[:-2], dtype=np.int64)) if a.ndim > 2 else 1
    b_is_shared = (b.ndim <= 2) or all(int(d) == 1 for d in b.shape[:-2])
    sub = _sublane(compute_dtype)

    if b_is_shared and a_batch == B:
        # Shared RHS (b broadcast along all batch dims): fold the whole batch
        # into the M axis -> one big (B*M, K) @ (K, N) matmul with dense MXU
        # tiles instead of B tiny per-batch matmuls.
        a_f = a.astype(compute_dtype).reshape((1, B * M, K))
        b_f = b.astype(compute_dtype).reshape((1, K, N))
        idx0 = jnp.zeros((1,), jnp.int32)
        tm, Mp = _pick_tile(B * M, sub, _TM_MAX)
        tn, Np = _pick_tile(N, _LANE, _TN_MAX)
        tk, _ = _pick_tile(K, _LANE, _TK_MAX)
        tm, tn = _split_for_megacore(1, tm, Mp, tn, Np, sub)
        out = _pallas_bmm(idx0, idx0, a_f, b_f,
                          tm=tm, tn=tn, tk=tk, out_dtype=np.dtype(compute_dtype))
        out = out.reshape((B, M, N))
    else:
        # General batched case: batch broadcasting handled via scalar-prefetch
        # gather indices (no materialized broadcast copies in HBM).
        # TODO(synk): for tiny per-batch (M, N) with large B, pack several batch
        # entries into one MXU tile instead of one grid step per batch entry.
        a_idx = jnp.asarray(_broadcast_batch_indices(batch_shape, a.shape[:-2]))
        b_idx = jnp.asarray(_broadcast_batch_indices(batch_shape, b.shape[:-2]))
        a3 = a.astype(compute_dtype).reshape((-1,) + a.shape[-2:])
        b3 = b.astype(compute_dtype).reshape((-1,) + b.shape[-2:])
        tm, Mp = _pick_tile(M, sub, _TM_MAX)
        tn, Np = _pick_tile(N, _LANE, _TN_MAX)
        tk, _ = _pick_tile(K, _LANE, _TK_MAX)
        tm, tn = _split_for_megacore(B, tm, Mp, tn, Np, sub)
        out = _pallas_bmm(a_idx, b_idx, a3, b3,
                          tm=tm, tn=tn, tk=tk, out_dtype=np.dtype(compute_dtype))

    if integer_out:
        out = jnp.rint(out).astype(out_dtype)
    elif out.dtype != out_dtype:
        out = out.astype(out_dtype)
    return _finalize(out)


# ---------------------------------------------------------------------------
# Demo / self-check.
# ---------------------------------------------------------------------------
if __name__ == "__main__":
    key = jax.random.PRNGKey(0)
    k1, k2, k3, k4, k5, k6 = jax.random.split(key, 6)

    # Case 1: batched matmul with leading-dim broadcasting (general gather path).
    # a: (2, 4, 8, 32), b: (4, 32, 16) -> (2, 4, 8, 16)
    a1 = jax.random.normal(k1, (2, 4, 8, 32), dtype=jnp.float32)
    b1 = jax.random.normal(k2, (4, 32, 16), dtype=jnp.float32)
    o1 = matmul(a1, b1)
    jax.block_until_ready(o1)
    r1 = jnp.matmul(a1, b1, precision=lax.Precision.HIGHEST)
    assert o1.shape == r1.shape, (o1.shape, r1.shape)
    assert jnp.allclose(o1, r1, atol=1e-4, rtol=1e-4), "case 1 mismatch"

    # Case 2: shared RHS (b has no batch dims) -> folded (B*M, K) @ (K, N) path.
    b2 = jax.random.normal(k3, (32, 16), dtype=jnp.float32)
    o2 = matmul(a1, b2)
    jax.block_until_ready(o2)
    r2 = jnp.matmul(a1, b2, precision=lax.Precision.HIGHEST)
    assert o2.shape == r2.shape, (o2.shape, r2.shape)
    assert jnp.allclose(o2, r2, atol=1e-4, rtol=1e-4), "case 2 mismatch"

    # Case 3: 1-D rhs vector (torch 1-D promotion semantics).
    v = jax.random.normal(k4, (32,), dtype=jnp.float32)
    o3 = matmul(a1, v)
    jax.block_until_ready(o3)
    r3 = jnp.matmul(a1, v, precision=lax.Precision.HIGHEST)
    assert o3.shape == r3.shape, (o3.shape, r3.shape)
    assert jnp.allclose(o3, r3, atol=1e-4, rtol=1e-4), "case 3 mismatch"

    # Case 4: unaligned dims exercise minimal-padding tile selection.
    a4 = jax.random.normal(k5, (3, 7, 40), dtype=jnp.float32)
    b4 = jax.random.normal(k6, (3, 40, 20), dtype=jnp.float32)
    o4 = matmul(a4, b4)
    jax.block_until_ready(o4)
    r4 = jnp.matmul(a4, b4, precision=lax.Precision.HIGHEST)
    assert o4.shape == r4.shape, (o4.shape, r4.shape)
    assert jnp.allclose(o4, r4, atol=1e-4, rtol=1e-4), "case 4 mismatch"

    # Case 5: bf16 inputs (16-row sublane alignment, fast MXU path).
    a5 = jax.random.normal(k1, (2, 64, 256), dtype=jnp.bfloat16)
    b5 = jax.random.normal(k2, (256, 128), dtype=jnp.bfloat16)
    o5 = matmul(a5, b5)
    jax.block_until_ready(o5)
    r5 = jnp.matmul(a5.astype(jnp.float32), b5.astype(jnp.float32))
    assert o5.shape == r5.shape and o5.dtype == jnp.bfloat16
    assert jnp.allclose(o5.astype(jnp.float32), r5, atol=0.5, rtol=5e-2), "case 5 mismatch"

    # Case 6: small integer matmul (exact via f32 HIGHEST-precision path).
    ai = (jnp.arange(32, dtype=jnp.int32).reshape(4, 8) % 13) - 6
    bi = (jnp.arange(40, dtype=jnp.int32).reshape(8, 5) % 7) - 3
    oi = matmul(ai, bi)
    jax.block_until_ready(oi)
    ri = np.matmul(np.asarray(ai), np.asarray(bi))
    assert oi.shape == ri.shape and oi.dtype == jnp.int32
    assert np.array_equal(np.asarray(oi), ri), "case 6 mismatch"

    print("KERNEL_OK")
</pallas_src>

<mosaic_0001>
module attributes {stable_mosaic.version = 11 : i64} {
  func.func @_bmm_kernel(%arg0: i32, %arg1: i32, %arg2: i32, %arg3: i32, %arg4: memref<8xi32, #tpu.memory_space<smem>>, %arg5: memref<8xi32, #tpu.memory_space<smem>>, %arg6: memref<1x8x128xf32, #tpu.memory_space<vmem>>, %arg7: memref<1x128x128xf32, #tpu.memory_space<vmem>>, %arg8: memref<1x8x128xf32, #tpu.memory_space<vmem>>, %arg9: memref<8x128xf32, #tpu.memory_space<vmem>>) attributes {dimension_semantics = [#tpu.dimension_semantics<parallel>, #tpu.dimension_semantics<parallel>, #tpu.dimension_semantics<parallel>, #tpu.dimension_semantics<arbitrary>], iteration_bounds = array<i64: 8, 1, 1, 1>, scalar_prefetch = 2 : i64, scratch_operands = 1 : i64, tpu.core_type = #tpu.core_type<tc>, window_params = [{transform_indices = @transform_0, window_bounds = array<i64: 1, 8, 128>}, {transform_indices = @transform_1, window_bounds = array<i64: 1, 128, 128>}, {transform_indices = @transform_2, window_bounds = array<i64: 1, 8, 128>}]} {
    %c0_i32 = arith.constant 0 : i32
    %0 = arith.cmpi eq, %arg3, %c0_i32 : i32
    %1 = arith.extui %0 : i1 to i32
    %c0_i32_0 = arith.constant 0 : i32
    %2 = arith.cmpi ne, %1, %c0_i32_0 : i32
    scf.if %2 {
      %cst_12 = arith.constant 0.000000e+00 : f32
      %14 = vector.broadcast %cst_12 : f32 to vector<8x128xf32>
      %c0_13 = arith.constant 0 : index
      %c0_14 = arith.constant 0 : index
      %15 = vector.load %arg9[%c0_13, %c0_14] : memref<8x128xf32, #tpu.memory_space<vmem>>, vector<8x128xf32>
      tpu.vector_store %arg9[%c0_13, %c0_14], %14 {strides = array<i32>} : memref<8x128xf32, #tpu.memory_space<vmem>>, vector<8x128xf32>,
    } else {
    }
    %c0 = arith.constant 0 : index
    %c0_1 = arith.constant 0 : index
    %3 = vector.load %arg9[%c0, %c0_1] : memref<8x128xf32, #tpu.memory_space<vmem>>, vector<8x128xf32>
    %c0_2 = arith.constant 0 : index
    %c0_3 = arith.constant 0 : index
    %c0_4 = arith.constant 0 : index
    %4 = vector.load %arg6[%c0_2, %c0_3, %c0_4] : memref<1x8x128xf32, #tpu.memory_space<vmem>>, vector<1x8x128xf32>
    %5 = vector.shape_cast %4 : vector<1x8x128xf32> to vector<8x128xf32>
    %c0_5 = arith.constant 0 : index
    %c0_6 = arith.constant 0 : index
    %c0_7 = arith.constant 0 : index
    %6 = vector.load %arg7[%c0_5, %c0_6, %c0_7] : memref<1x128x128xf32, #tpu.memory_space<vmem>>, vector<1x128x128xf32>
    %7 = vector.shape_cast %6 : vector<1x128x128xf32> to vector<128x128xf32>
    %cst = arith.constant dense<0.000000e+00> : vector<8x128xf32>
    %8 = tpu.matmul %5, %7, %cst {dimension_numbers = #tpu.dot_dimension_numbers<[1], [0], [0], [1], [0, 0, 1, 1], [], []>, precision = #tpu.contract_precision<fp32>} : vector<8x128xf32>, vector<128x128xf32>, vector<8x128xf32> -> vector<8x128xf32>
    %9 = arith.addf %3, %8 : vector<8x128xf32>
    %c0_8 = arith.constant 0 : index
    %c0_9 = arith.constant 0 : index
    %10 = vector.load %arg9[%c0_8, %c0_9] : memref<8x128xf32, #tpu.memory_space<vmem>>, vector<8x128xf32>
    tpu.vector_store %arg9[%c0_8, %c0_9], %9 {strides = array<i32>} : memref<8x128xf32, #tpu.memory_space<vmem>>, vector<8x128xf32>,
    %c0_i32_10 = arith.constant 0 : i32
    %11 = arith.cmpi eq, %arg3, %c0_i32_10 : i32
    %12 = arith.extui %11 : i1 to i32
    %c0_i32_11 = arith.constant 0 : i32
    %13 = arith.cmpi ne, %12, %c0_i32_11 : i32
    scf.if %13 {
      %c0_12 = arith.constant 0 : index
      %c0_13 = arith.constant 0 : index
      %14 = vector.load %arg9[%c0_12, %c0_13] : memref<8x128xf32, #tpu.memory_space<vmem>>, vector<8x128xf32>
      %c0_14 = arith.constant 0 : index
      %c0_15 = arith.constant 0 : index
      %c0_16 = arith.constant 0 : index
      %15 = vector.load %arg8[%c0_14, %c0_15, %c0_16] : memref<1x8x128xf32, #tpu.memory_space<vmem>>, vector<1x8x128xf32>
      %16 = vector.shape_cast %15 : vector<1x8x128xf32> to vector<8x128xf32>
      %17 = vector.shape_cast %14 : vector<8x128xf32> to vector<1x8x128xf32>
      tpu.vector_store %arg8[%c0_14, %c0_15, %c0_16], %17 {strides = array<i32>} : memref<1x8x128xf32, #tpu.memory_space<vmem>>, vector<1x8x128xf32>,
    } else {
    }
    return
  }
  func.func @transform_0(%arg0: i32, %arg1: i32, %arg2: i32, %arg3: i32, %arg4: memref<8xi32, #tpu.memory_space<smem>>, %arg5: memref<8xi32, #tpu.memory_space<smem>>) -> (i32, i32, i32) {
    %0 = arith.index_cast %arg0 : i32 to index
    %1 = memref.load %arg4[%0] : memref<8xi32, #tpu.memory_space<smem>>
    %c0_i32 = arith.constant 0 : i32
    return %1, %arg1, %arg3 : i32, i32, i32
  }
  func.func @transform_1(%arg0: i32, %arg1: i32, %arg2: i32, %arg3: i32, %arg4: memref<8xi32, #tpu.memory_space<smem>>, %arg5: memref<8xi32, #tpu.memory_space<smem>>) -> (i32, i32, i32) {
    %0 = arith.index_cast %arg0 : i32 to index
    %1 = memref.load %arg5[%0] : memref<8xi32, #tpu.memory_space<smem>>
    %c0_i32 = arith.constant 0 : i32
    return %1, %arg3, %arg2 : i32, i32, i32
  }
  func.func @transform_2(%arg0: i32, %arg1: i32, %arg2: i32, %arg3: i32, %arg4: memref<8xi32, #tpu.memory_space<smem>>, %arg5: memref<8xi32, #tpu.memory_space<smem>>) -> (i32, i32, i32) {
    %c0_i32 = arith.constant 0 : i32
    return %arg0, %arg1, %arg2 : i32, i32, i32
  }
}

</mosaic_0001>

<bundles_post_ra>
// kernel: _pallas_bmm.1
= control target key start
LH: loop header
LB: loop body
LE: loop exit
PB: predicated region body
PF: predicated region fallthrough
CT: control target
= control target key end

     0   :  { %s935_s21 = smov [#allocation4]   ;;  %s936_s22 = smov [#allocation5]   ;;  %s1333_s0 = inlined_call_operand.vmem [shape: s32[8], index: 0, kind: input, shape index: {}]   ;;  %s1334_s2 = inlined_call_operand.vmem [shape: f32[8,8,128], index: 2, kind: input, shape index: {}]   ;;  %s1335_s3 = inlined_call_operand.vmem [shape: f32[4,128,128], index: 3, kind: input, shape index: {}]   ;;  %s1336_s4 = inlined_call_operand.hbm [shape: f32[8,8,128], index: 4, kind: output, shape index: {}]   ;;  %s1337_s1 = inlined_call_operand.vmem [shape: s32[8], index: 1, kind: input, shape index: {}]  }
   0x1   :  { %s10_s17 = sshll.u32 %s1333_s0, 4  ;;  %s15_s20 = sshll.u32 %s1337_s1, 4  ;;  %s11_s17 = int_to_ptr.vmem [resolvable:$true] %s10_s17  ;;  %s16_s20 = int_to_ptr.vmem [resolvable:$true] %s15_s20 }
   0x2   :  { %13 = dma.vmem_to_smem %s11_s17, 16, %s935_s21, [#allocation3] }
   0x3   :  { %18 = dma.vmem_to_smem %s16_s20, 16, %s936_s22, [#allocation3] }
   0x4   :  { %905 = dma.done.wait [#allocation3], 32 }
   0x5   :  { %906 = vsyncadd [#allocation3], 4294967264 }
   0x6   :  { %21 = sfence }
   0x7   :  { %22 = vsyncpa [#allocation7], 0 }
   0x8   :  { %24 = vsyncpa [#allocation7 + $0x1], 0  ;;  %s968_s23 = smov 0   ;;  %s970_s24 = smov 0  }
   0x9   :  { %s972_s0 = smov 0   ;;  %s974_s25 = smov 0  }
   0xa   :  { %s976_s1 = smov 0   ;;  %s978_s26 = smov 0  }
   0xb LB: > { %s758_s27 = sadd.s32 4294967295, %s933_s26   ;;  %s759_s28 = sadd.s32 4294967294, %s933_s26   ;;  %s933_s26 = sphi %s978_s26, %s30_s26   ;;  %s929_s1 = sphi %s976_s1, %s1344_s1   ;;  %s925_s25 = sphi %s974_s25, %s1343_s25   ;;  %s921_s0 = sphi %s972_s0, %s1342_s0   ;;  %s917_s24 = sphi %s970_s24, %s1341_s24   ;;  %s913_s23 = sphi %s968_s23, %s1340_s23  }
   0xc   : > { %s56_s29 = sadd.s32 1, %s929_s1  ;;  %s131_s30 = sadd.s32 1, %s921_s0 }
   0xd   : > { %p58_p0 = scmp.ge.s32.totalorder %s56_s29, 8  ;;  %p141_p1 = scmp.ne.s32.totalorder %s921_s0, %s917_s24 }
   0xe   : > { %p142_p2 = scmp.eq.s32.totalorder %s758_s27, 7  ;;  %p147_p3 = scmp.ne.s32.totalorder %s917_s24, %s913_s23 }
   0xf   : > { %s1346_s29 = smov (%p58_p0, %s56_s29), 0  ;;  %p148_p5 = scmp.eq.s32.totalorder %s759_s28, 7 }
  0x10   : > { %p1008_p4 = por %p142_p2, %p141_p1  ;;  %s124_s6 = ssub.s32 %s929_s1, %s1346_s29 }
  0x11   : > { %p762_p6 = scmp.ge.s32.totalorder %s933_s26, 1  ;;  %p129_p7 = scmp.eq.s32.totalorder %s124_s6, 0 }
  0x12   : > { %p1015_p8 = por %p148_p5, %p147_p3  ;;  %p199_p9 = scmp.lt.s32.totalorder %s933_s26, 9 }
  0x13   : > { %s1021_s8 = scalar_select %p129_p7, %s921_s0, %s131_s30  }
  0x14   : > { %p200_p10 = pnand %p762_p6, %p199_p9 }
  0x15   : > { %s252_s9 = sld [smem:[#allocation5 + %s925_s25]] (!%p200_p10)  ;;  %s237_s19 = sand.u32 (!%p200_p10), 1, %s917_s24  }
  0x16   : > { %203 = sbr.rel (%p200_p10) target bundleno = 237 (0xed), region = 28  ;;  %s1025_s10 = sld [smem:[#allocation4 + %s925_s25]] (!%p200_p10) }
  0x17   : > { %s763_s20 = sshll.u32 (!%p200_p10), %s237_s19, 3  ;;  %s768_s21 = sshll.u32 (!%p200_p10), %s925_s25, 3 }
  0x18   : > { %s651_s28 = scalar_lea.hbm (!%p200_p10), %s1336_s4, %s768_s21  ;;  %s239_s30 = scalar_lea.vmem (!%p200_p10), [#allocation6], %s763_s20 }
  0x19   : > { %s653_s6 = sshll.u32 (!%p200_p10), %s239_s30, 4  ;;  %s654_s6 = int_to_ptr.vmem [resolvable:$true] %s653_s6 }
  0x1b   : > { %p254_p11 = scmp.lt.s32.totalorder %s252_s9, 3 }
  0x1c   : > { %p241_p12 = scmp.lt.s32.totalorder %s1025_s10, 7 }
  0x1d   : > { %s1348_s9 = smov (!%p254_p11, %s252_s9), 3 }
  0x1e   : > { %s771_s11 = sshll.u32 %s1348_s9, 7  ;;  %s1350_s10 = smov (!%p241_p12, %s1025_s10), 7 }
  0x1f   : > { %s1030_s14 = scalar_lea.vmem %s1335_s3, %s771_s11  ;;  %s764_s15 = sshll.u32 %s1350_s10, 3 }
  0x20   : > { %v289_v0 = vld [vmem:[%s1030_s14 + $0x78] sm:$0xff]  ;;  %v288_v1 = vld [vmem:[%s1030_s14 + $0x70] sm:$0xff]  ;;  %v287_v2 = vld [vmem:[%s1030_s14 + $0x68] sm:$0xff]  ;;  %s250_s18 = scalar_lea.vmem %s1334_s2, %s764_s15  ;;  %s655_s9 = sshll.u32 %s651_s28, 4  ;;  %s656_s9 = int_to_ptr.hbm [resolvable:$true] %s655_s9 }
  0x21   : > { %v1035_v3 = vand.u32 4294901760, %v289_v0  ;;  %v1037_v4 = vand.u32 4294901760, %v288_v1  ;;  %v1039_v5 = vand.u32 4294901760, %v287_v2  ;;  %v286_v6 = vld [vmem:[%s1030_s14 + $0x60] sm:$0xff]  ;;  %v285_v7 = vld [vmem:[%s1030_s14 + $0x58] sm:$0xff]  ;;  %v284_v8 = vld [vmem:[%s1030_s14 + $0x50] sm:$0xff] }
  0x22   : > { %v1044_v9 = vand.u32 4294901760, %v286_v6  ;;  %v1046_v10 = vand.u32 4294901760, %v285_v7  ;;  %v1048_v11 = vand.u32 4294901760, %v284_v8  ;;  %v283_v12 = vld [vmem:[%s1030_s14 + $0x48] sm:$0xff]  ;;  %v282_v13 = vld [vmem:[%s1030_s14 + $0x40] sm:$0xff]  ;;  %v281_v18 = vld [vmem:[%s1030_s14 + $0x38] sm:$0xff] }
  0x23   : > { %291 = vmatpush.msra.mxu0 %v1035_v3  ;;  %v1054_v14 = vsub.f32 %v289_v0, %v1035_v3  ;;  %v1057_v15 = vsub.f32 %v288_v1, %v1037_v4  ;;  %v1060_v16 = vsub.f32 %v287_v2, %v1039_v5  ;;  %v1062_v17 = vand.u32 4294901760, %v283_v12  ;;  %487 = vmatpush.msra.mxu3 %v1035_v3  ;;  %v280_v26 = vld [vmem:[%s1030_s14 + $0x30] sm:$0xff]  ;;  %v279_v36 = vld [vmem:[%s1030_s14 + $0x28] sm:$0xff]  ;;  %v278_v42 = vld [vmem:[%s1030_s14 + $0x20] sm:$0xff]  ;;  %s639_s10 = scalar_lea.sflag [#allocation7], %s237_s19  ;;  %s867_s11 = sshra.s32 %s656_s9, 4  ;;  %s868_s11 = int_to_ptr.hbm [resolvable:$true] %s867_s11 }
  0x24   : > { %v1067_v19 = vsub.f32 %v286_v6, %v1044_v9  ;;  %v1070_v20 = vsub.f32 %v285_v7, %v1046_v10  ;;  %v1073_v21 = vsub.f32 %v284_v8, %v1048_v11  ;;  %v1080_v25 = vand.u32 4294901760, %v282_v13  ;;  %v277_v47 = vld [vmem:[%s1030_s14 + $0x18] sm:$0xff]  ;;  %v276_v55 = vld [vmem:[%s1030_s14 + $0x10] sm:$0xff]  ;;  %v275_v60 = vld [vmem:[%s1030_s14 + $0x8] sm:$0xff]  ;;  %s869_s25 = scalar_lea.hbm %s868_s11, 8  ;;  %p874_p2 = scmp.lt.s32.totalorder %s868_s11, %s1336_s4 }
  0x25   : > { %293 = vmatpush.msra.mxu0 %v1037_v4  ;;  %v333_v22 = vand.u32 4294901760, %v1054_v14  ;;  %v339_v23 = vand.u32 4294901760, %v1057_v15  ;;  %v345_v24 = vand.u32 4294901760, %v1060_v16  ;;  %434 = vmatpush.msra.mxu2 %v1054_v14  ;;  %v1085_v28 = vand.u32 4294901760, %v281_v18  ;;  %v274_v1 = vld [vmem:[%s1030_s14] sm:$0xff]  ;;  %p870_p13 = scmp.ne.s32.totalorder %s868_s11, %s869_s25  ;;  %s873_s14 = scalar_lea.hbm %s1336_s4, 64 }
  0x26   : > { %v351_v27 = vand.u32 4294901760, %v1067_v19  ;;  %v1088_v29 = vsub.f32 %v283_v12, %v1062_v17  ;;  %489 = vmatpush.msra.mxu3 %v1037_v4  ;;  %v357_v33 = vand.u32 4294901760, %v1070_v20  ;;  %v363_v34 = vand.u32 4294901760, %v1073_v21  ;;  %v273_v7 = vld [vmem:[%s250_s18] sm:$0xff]  ;;  %p875_p3 = scmp.lt.s32.totalorder %s873_s14, %s869_s25 }
  0x27   : > { %295 = vmatpush.msra.mxu0 %v1039_v5  ;;  %v334_v30 = vsub.f32 %v1054_v14, %v333_v22  ;;  %v340_v31 = vsub.f32 %v1057_v15, %v339_v23  ;;  %v346_v32 = vsub.f32 %v1060_v16, %v345_v24  ;;  %437 = vmatpush.msra.mxu2 %v1057_v15  ;;  %v1104_v35 = vand.u32 4294901760, %v280_v26  ;;  %p871_p0 = pnand %p870_p13, %p1008_p4 }
  0x28   : > { %491 = vmatpush.msra.mxu3 %v1039_v5  ;;  %v352_v39 = vsub.f32 %v1067_v19, %v351_v27  ;;  %v1118_v40 = vsub.f32 %v282_v13, %v1080_v25  ;;  %v369_v41 = vand.u32 4294901760, %v1088_v29  ;;  %v358_v44 = vsub.f32 %v1070_v20, %v357_v33  ;;  %p876_p5 = por %p875_p3, %p874_p2 }
  0x29   : > { %v335_v37 = vand.u32 4294901760, %v334_v30  ;;  %297 = vmatpush.msra.mxu0 %v1044_v9  ;;  %v341_v38 = vand.u32 4294901760, %v340_v31  ;;  %440 = vmatpush.msra.mxu2 %v1060_v16  ;;  %v347_v43 = vand.u32 4294901760, %v346_v32  ;;  %v1128_v45 = vand.u32 4294901760, %v279_v36  ;;  %p872_p1 = pneg %p871_p0 }
  0x2a   : > { %493 = vmatpush.msra.mxu3 %v1044_v9  ;;  %v1131_v46 = vsub.f32 %v281_v18, %v1085_v28  ;;  %v364_v48 = vsub.f32 %v1073_v21, %v363_v34  ;;  %v353_v49 = vand.u32 4294901760, %v352_v39  ;;  %v375_v50 = vand.u32 4294901760, %v1118_v40 }
  0x2b   : > { %336 = vmatpush.msra.mxu1 %v335_v37  ;;  %299 = vmatpush.msra.mxu0 %v1046_v10  ;;  %v1142_v51 = vand.u32 4294901760, %v278_v42  ;;  %v1145_v52 = vsub.f32 %v280_v26, %v1104_v35  ;;  %v370_v53 = vsub.f32 %v1088_v29, %v369_v41  ;;  %v1150_v54 = vand.u32 4294901760, %v277_v47  ;;  %p877_p6 = pnand %p876_p5, %p872_p1 }
  0x2c   : > { %443 = vmatpush.msra.mxu2 %v1067_v19  ;;  %495 = vmatpush.msra.mxu3 %v1046_v10  ;;  %v359_v56 = vand.u32 4294901760, %v358_v44  ;;  %v381_v57 = vand.u32 4294901760, %v1131_v46  ;;  %v1158_v58 = vsub.f32 %v279_v36, %v1128_v45  ;;  %v365_v59 = vand.u32 4294901760, %v364_v48 }
  0x2d   : > { %342 = vmatpush.msra.mxu1 %v341_v38  ;;  %301 = vmatpush.msra.mxu0 %v1048_v11  ;;  %v376_v61 = vsub.f32 %v1118_v40, %v375_v50  ;;  %v387_v62 = vand.u32 4294901760, %v1145_v52  ;;  %v1171_v63 = vand.u32 4294901760, %v276_v55  ;;  %v1174_v0 = vsub.f32 %v278_v42, %v1142_v51 }
  0x2e   : > { %446 = vmatpush.msra.mxu2 %v1070_v20  ;;  %497 = vmatpush.msra.mxu3 %v1048_v11  ;;  %v371_v2 = vand.u32 4294901760, %v370_v53  ;;  %v1178_v6 = vsub.f32 %v277_v47, %v1150_v54  ;;  %v382_v8 = vsub.f32 %v1131_v46, %v381_v57  ;;  %v393_v12 = vand.u32 4294901760, %v1158_v58 }
  0x2f   : > { %348 = vmatpush.msra.mxu1 %v347_v43  ;;  %303 = vmatpush.msra.mxu0 %v1062_v17  ;;  %v1187_v13 = vand.u32 4294901760, %v275_v60  ;;  %v1189_v18 = vand.u32 4294901760, %v273_v7  ;;  %v1191_v26 = vand.u32 4294901760, %v274_v1  ;;  %v377_v30 = vand.u32 4294901760, %v376_v61 }
  0x30   : > { %449 = vmatpush.msra.mxu2 %v1073_v21  ;;  %499 = vmatpush.msra.mxu3 %v1062_v17  ;;  %v388_v31 = vsub.f32 %v1145_v52, %v387_v62  ;;  %v399_v32 = vand.u32 4294901760, %v1174_v0  ;;  %v1201_v36 = vsub.f32 %v276_v55, %v1171_v63  ;;  %v405_v37 = vand.u32 4294901760, %v1178_v6 }
  0x31   : > { %354 = vmatpush.msra.mxu1 %v353_v49  ;;  %305 = vmatpush.msra.mxu0 %v1080_v25  ;;  %v383_v38 = vand.u32 4294901760, %v382_v8  ;;  %v394_v39 = vsub.f32 %v1158_v58, %v393_v12  ;;  %v1211_v42 = vsub.f32 %v275_v60, %v1187_v13  ;;  %v323_v43 = vsub.f32 %v273_v7, %v1189_v18 }
  0x32   : > { %452 = vmatpush.msra.mxu2 %v1088_v29  ;;  %501 = vmatpush.msra.mxu3 %v1080_v25  ;;  %v389_v44 = vand.u32 4294901760, %v388_v31  ;;  %v400_v47 = vsub.f32 %v1174_v0, %v399_v32  ;;  %v411_v48 = vand.u32 4294901760, %v1201_v36  ;;  %v1222_v49 = vsub.f32 %v274_v1, %v1191_v26 }
  0x33   : > { %360 = vmatpush.msra.mxu1 %v359_v56  ;;  %307 = vmatpush.msra.mxu0 %v1085_v28  ;;  %v395_v53 = vand.u32 4294901760, %v394_v39  ;;  %v406_v55 = vsub.f32 %v1178_v6, %v405_v37  ;;  %v417_v56 = vand.u32 4294901760, %v1211_v42 }
  0x34   : > { %455 = vmatpush.msra.mxu2 %v1118_v40  ;;  %503 = vmatpush.msra.mxu3 %v1085_v28  ;;  %v401_v60 = vand.u32 4294901760, %v400_v47  ;;  %v412_v61 = vsub.f32 %v1201_v36, %v411_v48  ;;  %v423_v1 = vand.u32 4294901760, %v1222_v49 }
  0x35   : > { %366 = vmatpush.msra.mxu1 %v365_v59  ;;  %309 = vmatpush.msra.mxu0 %v1104_v35  ;;  %v324_v59 = vand.u32 4294901760, %v323_v43  ;;  %v418_v7 = vsub.f32 %v1211_v42, %v417_v56 }
  0x36   : > { %458 = vmatpush.msra.mxu2 %v1131_v46  ;;  %505 = vmatpush.msra.mxu3 %v1104_v35  ;;  %v424_v31 = vsub.f32 %v1222_v49, %v423_v1 }
  0x37   : > { %372 = vmatpush.msra.mxu1 %v371_v2  ;;  %311 = vmatpush.msra.mxu0 %v1128_v45  ;;  %v407_v2 = vand.u32 4294901760, %v406_v55  ;;  %v325_v8 = vsub.f32 %v323_v43, %v324_v59 }
  0x38   : > { %461 = vmatpush.msra.mxu2 %v1145_v52  ;;  %507 = vmatpush.msra.mxu3 %v1128_v45 }
  0x39   : > { %378 = vmatpush.msra.mxu1 %v377_v30  ;;  %313 = vmatpush.msra.mxu0 %v1142_v51  ;;  %v413_v30 = vand.u32 4294901760, %v412_v61  ;;  %v326_v39 = vand.u32 4294901760, %v325_v8 }
  0x3a   : > { %464 = vmatpush.msra.mxu2 %v1158_v58  ;;  %509 = vmatpush.msra.mxu3 %v1142_v51 }
  0x3b   : > { %384 = vmatpush.msra.mxu1 %v383_v38  ;;  %315 = vmatpush.msra.mxu0 %v1150_v54  ;;  %v419_v38 = vand.u32 4294901760, %v418_v7 }
  0x3c   : > { %467 = vmatpush.msra.mxu2 %v1174_v0  ;;  %511 = vmatpush.msra.mxu3 %v1150_v54 }
  0x3d   : > { %390 = vmatpush.msra.mxu1 %v389_v44  ;;  %317 = vmatpush.msra.mxu0 %v1171_v63  ;;  %v425_v44 = vand.u32 4294901760, %v424_v31 }
  0x3e   : > { %470 = vmatpush.msra.mxu2 %v1178_v6  ;;  %513 = vmatpush.msra.mxu3 %v1171_v63 }
  0x3f   : > { %396 = vmatpush.msra.mxu1 %v395_v53  ;;  %319 = vmatpush.msra.mxu0 %v1187_v13 }
  0x40   : > { %473 = vmatpush.msra.mxu2 %v1201_v36  ;;  %515 = vmatpush.msra.mxu3 %v1187_v13 }
  0x41   : > { %402 = vmatpush.msra.mxu1 %v401_v60  ;;  %321 = vmatpush.msra.mxu0 %v1191_v26 }
  0x42   : > { %476 = vmatpush.msra.mxu2 %v1211_v42  ;;  %517 = vmatpush.msra.mxu3 %v1191_v26 }
  0x43   : > { %528 = vmatpush.msrb.mxu0 %v333_v22  ;;  %408 = vmatpush.msra.mxu1 %v407_v2 }
  0x44   : > { %479 = vmatpush.msra.mxu2 %v1222_v49  ;;  %521 = vmatmul.f32.vlgmr.msra.gmra.mxu3 %v324_v59 }
  0x45   : > { %532 = vmatpush.msrb.mxu0 %v339_v23  ;;  %414 = vmatpush.msra.mxu1 %v413_v30 }
  0x46   : > { %482 = vmatmul.f32.vlgmr.msra.gmra.mxu2 %v323_v43  ;;  %327 = vmatmul.f32.vlgmr.msra.gmra.mxu0 %v326_v39 }
  0x47   : > { %536 = vmatpush.msrb.mxu0 %v345_v24  ;;  %420 = vmatpush.msra.mxu1 %v419_v38 }
  0x49   : > { %540 = vmatpush.msrb.mxu0 %v351_v27  ;;  %426 = vmatpush.msra.mxu1 %v425_v44 }
  0x4a   : > { %428 = vmatmul.f32.vlgmr.msra.gmra.mxu1 %v1189_v18 }
  0x4b   : > { %595 = vmatpush.msrb.mxu1 %v1035_v3  ;;  %544 = vmatpush.msrb.mxu0 %v357_v33 }
  0x4d   : > { %597 = vmatpush.msrb.mxu1 %v1037_v4  ;;  %548 = vmatpush.msrb.mxu0 %v363_v34 }
  0x4f   : > { %599 = vmatpush.msrb.mxu1 %v1039_v5  ;;  %552 = vmatpush.msrb.mxu0 %v369_v41 }
  0x51   : > { %601 = vmatpush.msrb.mxu1 %v1044_v9  ;;  %556 = vmatpush.msrb.mxu0 %v375_v50 }
  0x53   : > { %603 = vmatpush.msrb.mxu1 %v1046_v10  ;;  %560 = vmatpush.msrb.mxu0 %v381_v57 }
  0x55   : > { %605 = vmatpush.msrb.mxu1 %v1048_v11  ;;  %564 = vmatpush.msrb.mxu0 %v387_v62 }
  0x57   : > { %607 = vmatpush.msrb.mxu1 %v1062_v17  ;;  %568 = vmatpush.msrb.mxu0 %v393_v12 }
  0x59   : > { %609 = vmatpush.msrb.mxu1 %v1080_v25  ;;  %572 = vmatpush.msrb.mxu0 %v399_v32 }
  0x5b   : > { %611 = vmatpush.msrb.mxu1 %v1085_v28  ;;  %576 = vmatpush.msrb.mxu0 %v405_v37 }
  0x5d   : > { %613 = vmatpush.msrb.mxu1 %v1104_v35  ;;  %580 = vmatpush.msrb.mxu0 %v411_v48 }
  0x5f   : > { %615 = vmatpush.msrb.mxu1 %v1128_v45  ;;  %584 = vmatpush.msrb.mxu0 %v417_v56 }
  0x61   : > { %617 = vmatpush.msrb.mxu1 %v1142_v51  ;;  %588 = vmatpush.msrb.mxu0 %v423_v1 }
  0x62   : > { %590 = vmatmul.f32.vlgmr.msrb.gmra.mxu0 %v1189_v18 }
  0x63   : > { %619 = vmatpush.msrb.mxu1 %v1150_v54 }
  0x65   : > { %621 = vmatpush.msrb.mxu1 %v1171_v63 }
  0x67   : > { %623 = vmatpush.msrb.mxu1 %v1187_v13 }
  0x69   : > { %625 = vmatpush.msrb.mxu1 %v1191_v26 }
  0x6a   : > { %627 = vmatmul.f32.vlgmr.msrb.gmra.mxu1 %v1189_v18 }
  0xc3   : > { %v328_v4 = vpop.f32.mrf.mxu0 }
  0xc7   : > { %v429_v3 = vpop.f32.mrf.mxu1  ;;  %v522_v11 = vpop.f32.mrf.mxu3 }
  0xc8   : > { %v430_v5 = vadd.f32 %v429_v3, %v328_v4 }
  0xc9   : > { %v483_v9 = vpop.f32.mrf.mxu2 }
  0xca   : > { %v484_v10 = vadd.f32 %v483_v9, %v430_v5 }
  0xcc   : > { %v523_v14 = vadd.f32 %v522_v11, %v484_v10 }
  0xdf   : > { %v591_v15 = vpop.f32.mrf.mxu0 }
  0xe0   : > { %v592_v16 = vadd.f32 %v591_v15, %v523_v14 }
  0xe7   : > { %v628_v17 = vpop.f32.mrf.mxu1 }
  0xe8   : > { %v629_v19 = vadd.f32 %v628_v17, %v592_v16 }
  0xea   : > { %637 = vst [vmem:[%s239_s30] sm:$0xff] %v629_v19 }
  0xeb   : > { %880 = shalt.err (!%p877_p6)
}
  0xec   : > { %772 = dma.vmem_to_hbm [thread:$0]  (%p1008_p4), %s654_s6, 128, %s656_s9, %s639_s10  }
  0xed PF: > { %p778_p7 = scmp.ge.s32.totalorder %s933_s26, 2  ;;  %s667_s17 = sand.u32 1, %s913_s23  }
  0xee   : > { %s668_s18 = scalar_lea.sflag [#allocation7], %s667_s17 }
  0xef   : > { %p775_p9 = pnand %p778_p7, %p1015_p8 }
  0xf1   : > { %p776_p10 = pneg %p775_p9 }
  0xf3   : > { %908 = dma.done.wait (%p776_p10), %s668_s18, 128  }
  0xf4   : > { %910 = vsyncadd (%p776_p10), %s668_s18, 4294967168  ;;  %s30_s26 = sadd.s32 1, %s933_s26   ;;  %s1340_s23 = smov %s917_s24 }
  0xf5   : > { %p27_p11 = scmp.ge.s32.totalorder %s30_s26, 10   ;;  %s1341_s24 = smov %s921_s0 }
  0xf6   : > { %s1342_s0 = smov %s1021_s8  ;;  %s1343_s25 = smov %s929_s1 }
  0xf7   : > { %s1344_s1 = smov %s1346_s29  ;;  %29 = sbr.rel (!%p27_p11) target bundleno = 11 (0xb), region = 74 }
  0xfc   :  { %674 = vsyncpa [#allocation7], 1 }
  0xfd   :  { %676 = vsyncpa [#allocation7 + $0x1], 1 }

</bundles_post_ra>
